<compile_context>
chip_gen: v7x
topology: tpu7x:2x2x1
jax: 0.10.0
libtpu: 0.0.40
codegen_flags: <defaults>
</compile_context>

<pallas_src>
import functools

import jax
import jax.numpy as jnp
from jax import lax
from jax.experimental import pallas as pl
from jax.experimental.pallas import tpu as pltpu


# ------------------------------ small helpers ------------------------------ #

def _round_up(x, m):
    return (x + m - 1) // m * m


def _per_core_vmem_bytes():
    """Per-TensorCore VMEM capacity (v5e/v6e: 128 MiB, v7x: 64 MiB per TC)."""
    try:
        return int(pltpu.get_tpu_info().vmem_capacity_bytes)
    except Exception:
        return 64 << 20  # conservative default = v7x per-TC budget


def _onehot(idx_row, n_nodes):
    # idx_row: [1, TE] int32 -> exact 0/1 one-hot matrix [N, TE] f32.
    te = idx_row.shape[-1]
    return (lax.broadcasted_iota(jnp.int32, (n_nodes, te), 0)
            == idx_row).astype(jnp.float32)


def _check_indices(src_ref, dst_ref, n_nodes):
    # jnp.take(..., mode='clip') would silently clamp corrupt edge lists; make
    # that loud when debug checks are enabled (no-op / not traced otherwise).
    if pl.debug_checks_enabled():
        pl.debug_check(jnp.max(src_ref[...]) < n_nodes, "src index out of range")
        pl.debug_check(jnp.max(dst_ref[...]) < n_nodes, "dst index out of range")


# ----------------- fused kernels: jnp.take in-kernel gather ---------------- #

def _take_linear_kernel(src_ref, dst_ref, h_ref, w_ref, b_ref, out_ref, *,
                        mode, n_nodes):
    # src/dst: [1, TE] i32   h: [N, D] (VMEM resident, single-buffered)
    # w: [1, D]              b: [1, 1] SMEM scalar     out: [1, TE] lane-dense
    _check_indices(src_ref, dst_ref, n_nodes)
    h = h_ref[...]
    hs = jnp.take(h, src_ref[0], axis=0, mode="clip")
    hd = jnp.take(h, dst_ref[0], axis=0, mode="clip")
    x = (hs + hd) * 0.5 if mode == "average" else hs * hd
    s = jnp.sum(x * w_ref[...], axis=-1)[None, :] + b_ref[0, 0]
    out_ref[...] = s.astype(out_ref.dtype)


def _take_concat_kernel(src_ref, dst_ref, h_ref, w1a_ref, w1b_ref, b1_ref,
                        w2_ref, b2_ref, out_ref, *, n_nodes, precision):
    _check_indices(src_ref, dst_ref, n_nodes)
    h = h_ref[...]
    hs = jnp.take(h, src_ref[0], axis=0, mode="clip")
    hd = jnp.take(h, dst_ref[0], axis=0, mode="clip")
    # TODO(synk): when D % 128 == 0, gather hs/hd into adjacent lane halves of
    # one [TE, 2D] buffer and fuse w1a/w1b into a single K=2D MXU matmul.
    z = jnp.dot(hs, w1a_ref[...], precision=precision,
                preferred_element_type=jnp.float32)
    z = z + jnp.dot(hd, w1b_ref[...], precision=precision,
                    preferred_element_type=jnp.float32)
    z = jnp.maximum(z + b1_ref[...], 0.0)
    s = jnp.sum(z * w2_ref[...], axis=-1)[None, :] + b2_ref[0, 0]
    out_ref[...] = s.astype(out_ref.dtype)


# --------------- fused kernels: one-hot MXU gather (small N) --------------- #
# Everything stays in a feature-major [*, TE] orientation: the gather is a
# standard (1,0)-contraction matmul, the score row is natively [1, TE]
# lane-dense, and no sublane<->lane relayouts are needed.

def _onehot_linear_kernel(src_ref, dst_ref, ht_ref, w_ref, b_ref, out_ref, *,
                          mode, n_nodes):
    # ht: [D, N] (node table transposed)   w: [D, 1]   b: [1, 1] SMEM scalar
    _check_indices(src_ref, dst_ref, n_nodes)
    ht = ht_ref[...]
    hp = lax.Precision.HIGHEST          # one-hot is exact 0/1 -> exact gather
    hsT = jnp.dot(ht, _onehot(src_ref[...], n_nodes), precision=hp,
                  preferred_element_type=jnp.float32)         # [D, TE]
    hdT = jnp.dot(ht, _onehot(dst_ref[...], n_nodes), precision=hp,
                  preferred_element_type=jnp.float32)
    x = (hsT + hdT) * 0.5 if mode == "average" else hsT * hdT
    s = jnp.sum(x * w_ref[...], axis=0, keepdims=True) + b_ref[0, 0]
    out_ref[...] = s.astype(out_ref.dtype)


def _onehot_concat_kernel(src_ref, dst_ref, ht_ref, w1at_ref, w1bt_ref,
                          b1t_ref, w2t_ref, b2_ref, out_ref, *,
                          n_nodes, precision):
    # ht: [D, N]   w1at/w1bt: [D, D]   b1t/w2t: [D, 1]   b2: [1, 1] SMEM
    _check_indices(src_ref, dst_ref, n_nodes)
    ht = ht_ref[...]
    hp = lax.Precision.HIGHEST
    hsT = jnp.dot(ht, _onehot(src_ref[...], n_nodes), precision=hp,
                  preferred_element_type=jnp.float32)         # [D, TE]
    hdT = jnp.dot(ht, _onehot(dst_ref[...], n_nodes), precision=hp,
                  preferred_element_type=jnp.float32)
    zT = jnp.dot(w1at_ref[...], hsT, precision=precision,
                 preferred_element_type=jnp.float32)
    zT = zT + jnp.dot(w1bt_ref[...], hdT, precision=precision,
                      preferred_element_type=jnp.float32)
    zT = jnp.maximum(zT + b1t_ref[...], 0.0)                  # [D, TE]
    s = jnp.sum(zT * w2t_ref[...], axis=0, keepdims=True) + b2_ref[0, 0]
    out_ref[...] = s.astype(out_ref.dtype)


# -------------- fallback kernels: pre-gathered edge features --------------- #

def _gathered_linear_kernel(hs_ref, hd_ref, w_ref, b_ref, out_ref, *, mode):
    hs, hd = hs_ref[...], hd_ref[...]
    x = (hs + hd) * 0.5 if mode == "average" else hs * hd
    s = jnp.sum(x * w_ref[...], axis=-1)[None, :] + b_ref[0, 0]
    out_ref[...] = s.astype(out_ref.dtype)


def _gathered_concat_kernel(hs_ref, hd_ref, w1a_ref, w1b_ref, b1_ref,
                            w2_ref, b2_ref, out_ref, *, precision):
    z = jnp.dot(hs_ref[...], w1a_ref[...], precision=precision,
                preferred_element_type=jnp.float32)
    z = z + jnp.dot(hd_ref[...], w1b_ref[...], precision=precision,
                    preferred_element_type=jnp.float32)
    z = jnp.maximum(z + b1_ref[...], 0.0)
    s = jnp.sum(z * w2_ref[...], axis=-1)[None, :] + b2_ref[0, 0]
    out_ref[...] = s.astype(out_ref.dtype)


# ---------------------------------- wrapper --------------------------------- #

def ml_predictor_forward(h, src, dst, params, edge_combine_type, *,
                         tile_e=None, fuse_gather=True, gather="auto",
                         mxu_precision=lax.Precision.HIGHEST):
    """Pallas forward of MLPredictor.

    h: [N, D] f32 node features, src/dst: [E] int edge endpoints.
    Returns [E] f32 edge scores (== layer(combine(h[src], h[dst]))).
    """
    if edge_combine_type not in ("average", "hadmard", "concat"):
        raise ValueError(edge_combine_type)
    if gather not in ("auto", "onehot", "take"):
        raise ValueError(gather)
    N, D = h.shape
    E = src.shape[0]
    lane_d = _round_up(D, 128)
    concat = edge_combine_type == "concat"

    # Generation-aware per-TensorCore VMEM budget: request ~75% of physical so
    # v5e/v6e (128 MiB) are not throttled to a v7x-sized cap, while still
    # fitting v7x's 64 MiB-per-TC budget (with dimension_semantics=("parallel",)
    # each core holds a private copy of the resident node table + weights).
    vmem_cap = _per_core_vmem_bytes()
    vmem_limit = int(vmem_cap * 3 // 4)

    # Edge tile: large enough to amortize the ~0.35us per-grid-step pipeline
    # overhead (per-step DMA on the fallback path is >= ~1 MiB at these sizes).
    if tile_e is None:
        tile_e = 4096 if lane_d <= 128 else (2048 if lane_d <= 512 else 1024)
    tile_e = max(128, min(_round_up(int(tile_e), 128), _round_up(E, 128)))

    # In-kernel gather strategy: one-hot MXU gather for small node tables
    # (provably vector-unit friendly), jnp.take row gather otherwise.
    if gather == "auto":
        use_onehot = (N <= 1024
                      and 2 * _round_up(N, 8) * tile_e * 4 <= (6 << 20))
    else:
        use_onehot = gather == "onehot"

    def fused_need(t):
        f32 = 4
        if use_onehot:
            resident = _round_up(D, 8) * _round_up(N, 128) * f32          # h.T
            resident += (2 * _round_up(D, 8) * lane_d + 2 * _round_up(D, 8) * 128
                         if concat else _round_up(D, 8) * 128) * f32      # weights
            inter = (2 * _round_up(N, 8) * t                              # one-hots
                     + (3 if concat else 2) * _round_up(D, 8) * t) * f32  # hsT/hdT(/zT)
        else:
            resident = _round_up(N, 8) * lane_d * f32                     # h
            resident += ((2 * _round_up(D, 8) + 16) if concat else 8) * lane_d * f32
            inter = (3 if concat else 2) * t * lane_d * f32               # hs/hd(/z)
        per_step = 3 * 8 * t * f32                                        # 2 idx + out
        return resident + 2 * per_step + inter + (4 << 20)                # + headroom

    def fallback_need(t):
        per_step = (2 * t * lane_d + 8 * t) * 4                           # hs/hd + out
        resident = ((2 * _round_up(D, 8) + 16) if concat else 8) * lane_d * 4
        inter = (t * lane_d * 4) if concat else 0
        return resident + 2 * per_step + inter + (4 << 20)

    def shrink(t, need):
        while t > 256 and need(t) > vmem_limit:
            t = max(128, (t // 256) * 128)
        return t

    smem_spec = pl.BlockSpec(memory_space=pltpu.MemorySpace.SMEM)

    def const_spec(a):
        # Grid-invariant block: single-buffered so the resident node table and
        # weights are not needlessly double-buffered in VMEM.
        zeros = (0,) * a.ndim
        return pl.BlockSpec(a.shape, lambda i: zeros,
                            pipeline_mode=pl.Buffered(1))

    cparams = pltpu.CompilerParams(
        dimension_semantics=("parallel",),    # edge tiles shard across TCs (v7x)
        vmem_limit_bytes=vmem_limit,
    )

    # ---- preferred path: node table resident in VMEM, gather in-kernel ----
    fused_tile = shrink(tile_e, fused_need)
    if fuse_gather and fused_need(fused_tile) <= vmem_limit:
        tile_e = fused_tile
        E_pad = _round_up(E, tile_e)
        G = E_pad // tile_e
        pad = E_pad - E
        src_p = jnp.pad(src.astype(jnp.int32), (0, pad)).reshape(1, E_pad)
        dst_p = jnp.pad(dst.astype(jnp.int32), (0, pad)).reshape(1, E_pad)

        if concat:
            if use_onehot:
                kernel = functools.partial(_onehot_concat_kernel, n_nodes=N,
                                           precision=mxu_precision)
                const_args = (h.T, params["w1a"].T, params["w1b"].T,
                              params["b1"].T, params["w2"].T)
            else:
                kernel = functools.partial(_take_concat_kernel, n_nodes=N,
                                           precision=mxu_precision)
                const_args = (h, params["w1a"], params["w1b"],
                              params["b1"], params["w2"])
            bias = params["b2"]
        else:
            if use_onehot:
                kernel = functools.partial(_onehot_linear_kernel, n_nodes=N,
                                           mode=edge_combine_type)
                const_args = (h.T, params["w"].T)
            else:
                kernel = functools.partial(_take_linear_kernel, n_nodes=N,
                                           mode=edge_combine_type)
                const_args = (h, params["w"])
            bias = params["b"]

        idx_spec = pl.BlockSpec((1, tile_e), lambda i: (0, i))
        out_spec = pl.BlockSpec((1, tile_e), lambda i: (0, i))   # lane-dense
        scores = pl.pallas_call(
            kernel,
            out_shape=jax.ShapeDtypeStruct((1, E_pad), jnp.float32),
            grid=(G,),
            in_specs=[idx_spec, idx_spec]
                     + [const_spec(a) for a in const_args] + [smem_spec],
            out_specs=out_spec,
            compiler_params=cparams,
        )(src_p, dst_p, *const_args, bias)
        return scores[0, :E]

    # ---- fallback: XLA gathers h_src/h_dst, kernel fuses combine + head ----
    # TODO(synk): for node tables that do not fit VMEM, replace this HBM round
    # trip with a manual DMA gather (scalar-prefetched src/dst, h in pl.ANY
    # HBM, double-buffered per-row async copies).
    tile_e = shrink(tile_e, fallback_need)
    E_pad = _round_up(E, tile_e)
    G = E_pad // tile_e
    pad = E_pad - E
    src_p = jnp.pad(src.astype(jnp.int32), (0, pad))
    dst_p = jnp.pad(dst.astype(jnp.int32), (0, pad))
    hs = jnp.take(h, src_p, axis=0)
    hd = jnp.take(h, dst_p, axis=0)

    feat_spec = pl.BlockSpec((tile_e, D), lambda i: (i, 0))
    out_spec = pl.BlockSpec((1, tile_e), lambda i: (0, i))
    if concat:
        kernel = functools.partial(_gathered_concat_kernel,
                                   precision=mxu_precision)
        weights = (params["w1a"], params["w1b"], params["b1"], params["w2"])
        bias = params["b2"]
    else:
        kernel = functools.partial(_gathered_linear_kernel,
                                   mode=edge_combine_type)
        weights = (params["w"],)
        bias = params["b"]
    scores = pl.pallas_call(
        kernel,
        out_shape=jax.ShapeDtypeStruct((1, E_pad), jnp.float32),
        grid=(G,),
        in_specs=[feat_spec, feat_spec]
                 + [const_spec(w) for w in weights] + [smem_spec],
        out_specs=out_spec,
        compiler_params=cparams,
    )(hs, hd, *weights, bias)
    return scores[0, :E]


# ----------------------- deterministic parameter init ---------------------- #

def init_params(key, h_feats, edge_combine_type):
    """PyTorch nn.Linear-style uniform(-1/sqrt(fan_in), 1/sqrt(fan_in)) init."""
    D = h_feats
    if edge_combine_type in ("average", "hadmard"):
        k1, k2 = jax.random.split(key)
        bound = 1.0 / (D ** 0.5)
        return {
            "w": jax.random.uniform(k1, (1, D), jnp.float32, -bound, bound),
            "b": jax.random.uniform(k2, (1, 1), jnp.float32, -bound, bound),
        }
    if edge_combine_type == "concat":
        k1, k2, k3, k4, k5 = jax.random.split(key, 5)
        bound1 = 1.0 / ((2 * D) ** 0.5)
        bound2 = 1.0 / (D ** 0.5)
        return {
            "w1a": jax.random.uniform(k1, (D, D), jnp.float32, -bound1, bound1),
            "w1b": jax.random.uniform(k2, (D, D), jnp.float32, -bound1, bound1),
            "b1": jax.random.uniform(k3, (1, D), jnp.float32, -bound1, bound1),
            "w2": jax.random.uniform(k4, (1, D), jnp.float32, -bound2, bound2),
            "b2": jax.random.uniform(k5, (1, 1), jnp.float32, -bound2, bound2),
        }
    raise ValueError(edge_combine_type)


# --------------------------------- reference -------------------------------- #

def reference_forward(h, src, dst, params, edge_combine_type):
    hp = lax.Precision.HIGHEST          # faithful to PyTorch full-f32 math
    hs, hd = h[src], h[dst]
    if edge_combine_type in ("average", "hadmard"):
        x = (hs + hd) * 0.5 if edge_combine_type == "average" else hs * hd
        return jnp.dot(x, params["w"][0], precision=hp) + params["b"][0, 0]
    z = (jnp.dot(hs, params["w1a"], precision=hp)
         + jnp.dot(hd, params["w1b"], precision=hp) + params["b1"])
    z = jnp.maximum(z, 0.0)
    return jnp.dot(z, params["w2"][0], precision=hp) + params["b2"][0, 0]


# ----------------------------------- main ----------------------------------- #

if __name__ == "__main__":
    key = jax.random.PRNGKey(0)
    k_h, k_src, k_dst, k_params = jax.random.split(key, 4)

    N = 16     # number of nodes
    D = 32     # h_feats
    E = 200    # number of edges (not a tile multiple -> exercises padding)

    h = jax.random.normal(k_h, (N, D), jnp.float32)
    src = jax.random.randint(k_src, (E,), 0, N, jnp.int32)
    dst = jax.random.randint(k_dst, (E,), 0, N, jnp.int32)

    ok = True
    for mode_idx, combine in enumerate(("average", "hadmard", "concat")):
        params = init_params(jax.random.fold_in(k_params, mode_idx), D, combine)
        ref = reference_forward(h, src, dst, params, combine)
        variants = (
            dict(fuse_gather=True, gather="onehot"),   # one-hot MXU gather
            dict(fuse_gather=True, gather="take"),     # jnp.take row gather
            dict(fuse_gather=False),                   # XLA-gather fallback
        )
        for kw in variants:
            out = jax.block_until_ready(
                ml_predictor_forward(h, src, dst, params, combine, **kw))
            if out.shape != ref.shape or not jnp.allclose(out, ref,
                                                          rtol=1e-5, atol=1e-5):
                ok = False
                err = float(jnp.max(jnp.abs(out - ref)))
                print(f"MISMATCH combine={combine} kw={kw} max_abs_err={err}")

    if ok:
        print("KERNEL_OK")
</pallas_src>

<mosaic_0001>
module attributes {stable_mosaic.version = 11 : i64} {
  func.func @_onehot_linear_kernel(%arg0: i32, %arg1: memref<1x256xi32, #tpu.memory_space<vmem>>, %arg2: memref<1x256xi32, #tpu.memory_space<vmem>>, %arg3: memref<32x16xf32, #tpu.memory_space<vmem>>, %arg4: memref<32x1xf32, #tpu.memory_space<vmem>>, %arg5: memref<1x1xf32, #tpu.memory_space<smem>>, %arg6: memref<1x256xf32, #tpu.memory_space<vmem>>) attributes {dimension_semantics = [#tpu.dimension_semantics<parallel>], iteration_bounds = array<i64: 1>, scalar_prefetch = 0 : i64, scratch_operands = 0 : i64, tpu.core_type = #tpu.core_type<tc>, window_params = [{transform_indices = @transform_0, window_bounds = array<i64: 1, 256>}, {transform_indices = @transform_1, window_bounds = array<i64: 1, 256>}, {pipeline_mode = #tpu.pipeline_mode<synchronous>, transform_indices = @transform_2, window_bounds = array<i64: 32, 16>}, {pipeline_mode = #tpu.pipeline_mode<synchronous>, transform_indices = @transform_3, window_bounds = array<i64: 32, 1>}, {transform_indices = @transform_4, window_bounds = array<i64: 1, 1>}, {transform_indices = @transform_5, window_bounds = array<i64: 1, 256>}]} {
    %c0 = arith.constant 0 : index
    %c0_0 = arith.constant 0 : index
    %0 = vector.load %arg3[%c0, %c0_0] : memref<32x16xf32, #tpu.memory_space<vmem>>, vector<32x16xf32>
    %c0_1 = arith.constant 0 : index
    %c0_2 = arith.constant 0 : index
    %1 = vector.load %arg1[%c0_1, %c0_2] : memref<1x256xi32, #tpu.memory_space<vmem>>, vector<1x256xi32>
    %2 = tpu.iota {dimensions = array<i32: 0>} : vector<16x256xi32>
    %3 = vector.broadcast %1 : vector<1x256xi32> to vector<16x256xi32>
    %4 = arith.cmpi eq, %2, %3 : vector<16x256xi32>
    %5 = arith.extui %4 : vector<16x256xi1> to vector<16x256xi32>
    %6 = arith.sitofp %5 : vector<16x256xi32> to vector<16x256xf32>
    %cst = arith.constant dense<0.000000e+00> : vector<32x256xf32>
    %7 = tpu.matmul %0, %6, %cst {dimension_numbers = #tpu.dot_dimension_numbers<[1], [0], [0], [1], [0, 0, 1, 1], [], []>, precision = #tpu.contract_precision<fp32>} : vector<32x16xf32>, vector<16x256xf32>, vector<32x256xf32> -> vector<32x256xf32>
    %c0_3 = arith.constant 0 : index
    %c0_4 = arith.constant 0 : index
    %8 = vector.load %arg2[%c0_3, %c0_4] : memref<1x256xi32, #tpu.memory_space<vmem>>, vector<1x256xi32>
    %9 = tpu.iota {dimensions = array<i32: 0>} : vector<16x256xi32>
    %10 = vector.broadcast %8 : vector<1x256xi32> to vector<16x256xi32>
    %11 = arith.cmpi eq, %9, %10 : vector<16x256xi32>
    %12 = arith.extui %11 : vector<16x256xi1> to vector<16x256xi32>
    %13 = arith.sitofp %12 : vector<16x256xi32> to vector<16x256xf32>
    %cst_5 = arith.constant dense<0.000000e+00> : vector<32x256xf32>
    %14 = tpu.matmul %0, %13, %cst_5 {dimension_numbers = #tpu.dot_dimension_numbers<[1], [0], [0], [1], [0, 0, 1, 1], [], []>, precision = #tpu.contract_precision<fp32>} : vector<32x16xf32>, vector<16x256xf32>, vector<32x256xf32> -> vector<32x256xf32>
    %15 = arith.addf %7, %14 : vector<32x256xf32>
    %cst_6 = arith.constant 5.000000e-01 : f32
    %16 = vector.broadcast %cst_6 : f32 to vector<32x256xf32>
    %17 = arith.mulf %15, %16 : vector<32x256xf32>
    %c0_7 = arith.constant 0 : index
    %c0_8 = arith.constant 0 : index
    %18 = vector.load %arg4[%c0_7, %c0_8] : memref<32x1xf32, #tpu.memory_space<vmem>>, vector<32x1xf32>
    %19 = vector.broadcast %18 : vector<32x1xf32> to vector<32x256xf32>
    %20 = arith.mulf %17, %19 : vector<32x256xf32>
    %cst_9 = arith.constant dense<0.000000e+00> : vector<256xf32>
    %21 = vector.multi_reduction <add>, %20, %cst_9 [0] : vector<32x256xf32> to vector<256xf32>
    %22 = vector.shape_cast %21 : vector<256xf32> to vector<1x256xf32>
    %c0_10 = arith.constant 0 : index
    %c0_11 = arith.constant 0 : index
    %23 = memref.load %arg5[%c0_10, %c0_11] : memref<1x1xf32, #tpu.memory_space<smem>>
    %24 = vector.broadcast %23 : f32 to vector<1x256xf32>
    %25 = arith.addf %22, %24 : vector<1x256xf32>
    %c0_12 = arith.constant 0 : index
    %c0_13 = arith.constant 0 : index
    %26 = vector.load %arg6[%c0_12, %c0_13] : memref<1x256xf32, #tpu.memory_space<vmem>>, vector<1x256xf32>
    tpu.vector_store %arg6[%c0_12, %c0_13], %25 {strides = array<i32>} : memref<1x256xf32, #tpu.memory_space<vmem>>, vector<1x256xf32>,
    return
  }
  func.func @transform_0(%arg0: i32) -> (i32, i32) {
    %c0_i32 = arith.constant 0 : i32
    %c0_i32_0 = arith.constant 0 : i32
    return %c0_i32, %arg0 : i32, i32
  }
  func.func @transform_1(%arg0: i32) -> (i32, i32) {
    %c0_i32 = arith.constant 0 : i32
    %c0_i32_0 = arith.constant 0 : i32
    return %c0_i32, %arg0 : i32, i32
  }
  func.func @transform_2(%arg0: i32) -> (i32, i32) {
    %c0_i32 = arith.constant 0 : i32
    %c0_i32_0 = arith.constant 0 : i32
    %c0_i32_1 = arith.constant 0 : i32
    return %c0_i32, %c0_i32_0 : i32, i32
  }
  func.func @transform_3(%arg0: i32) -> (i32, i32) {
    %c0_i32 = arith.constant 0 : i32
    %c0_i32_0 = arith.constant 0 : i32
    %c0_i32_1 = arith.constant 0 : i32
    return %c0_i32, %c0_i32_0 : i32, i32
  }
  func.func @transform_4(%arg0: i32) -> (i32, i32) {
    %c0_i32 = arith.constant 0 : i32
    %c0_i32_0 = arith.constant 0 : i32
    %c0_i32_1 = arith.constant 0 : i32
    return %c0_i32, %c0_i32_0 : i32, i32
  }
  func.func @transform_5(%arg0: i32) -> (i32, i32) {
    %c0_i32 = arith.constant 0 : i32
    %c0_i32_0 = arith.constant 0 : i32
    return %c0_i32, %arg0 : i32, i32
  }
}

</mosaic_0001>

<bundles_post_ra>
// kernel: tpu_custom_call.1
= control target key start
LH: loop header
LB: loop body
LE: loop exit
PB: predicated region body
PF: predicated region fallthrough
CT: control target
= control target key end

     0   :  { %v27_v0 = vlaneseq  ;;  %v1658_v4 = vmov 0.0   ;;  %vm71_vm0 = vcmask 130048   ;;  %v1659_v12 = vmov 0   ;;  %s2010_s0 = inlined_call_operand.vmem [shape: s32[1,256], index: 0, kind: input, shape index: {}]   ;;  %s2011_s1 = inlined_call_operand.vmem [shape: s32[1,256], index: 1, kind: input, shape index: {}]   ;;  %s2012_s2 = inlined_call_operand.vmem [shape: f32[32,16], index: 2, kind: input, shape index: {}]   ;;  %s2013_s3 = inlined_call_operand.vmem [shape: f32[32,1], index: 3, kind: input, shape index: {}]   ;;  %s2014_s4 = inlined_call_operand.<no memory space> [shape: f32[1,1], index: 4, kind: input, shape index: {}]   ;;  %s2015_s5 = inlined_call_operand.hbm [shape: f32[1,256], index: 5, kind: output, shape index: {}]  }
   0x1   :  { %v22_v1 = vld [vmem:[%s2012_s2] sm:$0xff]  ;;  %152 = vmatprep.mubr.f32.mxu1 %v1658_v4  ;;  %790 = vmatprep.mubr.f32.mxu0 %v1658_v4  ;;  %v23_v5 = vld [vmem:[%s2012_s2 + $0x8] sm:$0xff]  ;;  %v24_v6 = vld [vmem:[%s2012_s2 + $0x10] sm:$0xff] }
   0x2   :  { %v50_v2 = vld [vmem:[%s2011_s1] sm:$0x3]  ;;  %v1711_v7 = vshrl.u32 %v27_v0, 7  ;;  %v73_v8 = vsel %vm71_vm0, %v22_v1, 0  ;;  %v76_v9 = vsel %vm71_vm0, %v23_v5, 0  ;;  %v79_v10 = vsel %vm71_vm0, %v24_v6, 0  ;;  %1632 = vset.pattern.permute.xlu0 %v1659_v12  ;;  %1633 = vset.pattern.permute.xlu1 %v1659_v12 }
   0x3   :  { %v26_v3 = vld [vmem:[%s2010_s0] sm:$0x3]  ;;  %v25_v11 = vld [vmem:[%s2012_s2 + $0x18] sm:$0xff]  ;;  %v1719_v14 = vand.u32 4294901760, %v73_v8  ;;  %v1721_v15 = vand.u32 4294901760, %v76_v9  ;;  %v1723_v16 = vand.u32 4294901760, %v79_v10 }
   0x4   :  { %v1368_v13 = vld [vmem:[%s2013_s3] sm:$0xff]  ;;  %v82_v17 = vsel %vm71_vm0, %v25_v11, 0  ;;  %v1370_v18 = vld [vmem:[%s2013_s3 + $0x10] sm:$0xff]  ;;  %v29_v19 = vadd.s32 8, %v1711_v7  ;;  %v36_v20 = vsub.s32 1, %v1711_v7  ;;  %v32_v21 = vsub.s32 0, %v1711_v7 }
   0x5   :  { %1374 = vperm.xlu0 %1632, %v1368_v13   ;;  %v1731_v22 = vand.u32 4294901760, %v82_v17  ;;  %v1369_v23 = vld [vmem:[%s2013_s3 + $0x8] sm:$0xff]  ;;  %1384 = vperm.xlu1 %1633, %v1370_v18   ;;  %v1737_v24 = vsub.f32 %v73_v8, %v1719_v14  ;;  %v1740_v25 = vsub.f32 %v76_v9, %v1721_v15  ;;  %v1743_v26 = vsub.f32 %v79_v10, %v1723_v16  ;;  %v1371_v27 = vld [vmem:[%s2013_s3 + $0x18] sm:$0xff] }
   0x6   :  { %11 = vsyncpa [#allocation4], 0  ;;  %v58_v28 = vrot.slane %v50_v2, %v36_v20  ;;  %v37_v29 = vrot.slane %v26_v3, %v36_v20  ;;  %v54_v30 = vrot.slane %v50_v2, %v32_v21  ;;  %v33_v31 = vrot.slane %v26_v3, %v32_v21  ;;  %s1662_s11 = smov [#allocation3]  }
   0x7   :  { %v1749_v32 = vand.u32 4294901760, %v1737_v24  ;;  %v1752_v33 = vand.u32 4294901760, %v1740_v25  ;;  %v1755_v34 = vand.u32 4294901760, %v1743_v26  ;;  %v1758_v35 = vsub.f32 %v82_v17, %v1731_v22  ;;  %s1451_s12 = sshll.u32 %s1662_s11, 4  ;;  %s1452_s12 = int_to_ptr.vmem [resolvable:$true] %s1451_s12 }
   0x8   :  { %vm60_vm1 = vcmp.eq.s32.totalorder %v1711_v7, %v58_v28  ;;  %vm62_vm2 = vcmp.eq.s32.totalorder %v29_v19, %v58_v28  ;;  %vm39_vm3 = vcmp.eq.s32.totalorder %v1711_v7, %v37_v29  ;;  %vm41_vm4 = vcmp.eq.s32.totalorder %v29_v19, %v37_v29  ;;  %s1634_s13 = scalar_lea.vmem %s1452_s12, 32  ;;  %p1639_p1 = scmp.lt.s32.totalorder %s1452_s12, %s1452_s12 }
   0x9   :  { %1379 = vperm.xlu0 %1632, %v1369_v23   ;;  %1389 = vperm.xlu1 %1633, %v1371_v27   ;;  %v1464_v36 = vsel %vm60_vm1, 1.0, %v1658_v4  ;;  %v1466_v37 = vsel %vm62_vm2, 1.0, %v1658_v4  ;;  %vm1764_vm5 = vmpackc.low %vm62_vm2, %vm60_vm1  ;;  %v1460_v39 = vsel %vm39_vm3, 1.0, %v1658_v4  ;;  %v1462_v40 = vsel %vm41_vm4, 1.0, %v1658_v4  ;;  %p1635_p0 = scmp.ne.s32.totalorder %s1452_s12, %s1634_s13  ;;  %p1640_p2 = scmp.lt.s32.totalorder %s1634_s13, %s1634_s13 }
   0xa   :  { %v1660_v41 = vmov 1.0|1.0   ;;  %v1773_v42 = vsub.f32 %v1464_v36, %v1464_v36  ;;  %v1775_v43 = vsub.f32 %v1466_v37, %v1466_v37  ;;  %vm1777_vm6 = vmpackc.low %vm41_vm4, %vm39_vm3  ;;  %v1781_v45 = vsub.f32 %v1460_v39, %v1460_v39 }
   0xb   :  { %1492 = vmatprep.subr.msk.bf16.mxu1 %vm1764_vm5, %v1660_v41  ;;  %v1783_v46 = vsub.f32 %v1462_v40, %v1462_v40  ;;  %1516 = vmatprep.subr.msk.bf16.mxu0 %vm1777_vm6, %v1660_v41  ;;  %vm59_vm7 = vcmp.eq.s32.totalorder %v1711_v7, %v54_v30  ;;  %vm61_vm8 = vcmp.eq.s32.totalorder %v29_v19, %v54_v30  ;;  %v1857_v36 = vand.u32 4294901760, %v1758_v35  ;;  %p1641_p3 = por %p1640_p2, %p1639_p1 }
   0xc   :  { %vm38_vm9 = vcmp.eq.s32.totalorder %v1711_v7, %v33_v31  ;;  %vm40_vm10 = vcmp.eq.s32.totalorder %v29_v19, %v33_v31  ;;  %v1463_v47 = vsel %vm59_vm7, 1.0, %v1658_v4  ;;  %v1465_v48 = vsel %vm61_vm8, 1.0, %v1658_v4  ;;  %vm1792_vm11 = vmpackc.low %vm61_vm8, %vm59_vm7 }
   0xd   :  { %v1459_v50 = vsel %vm38_vm9, 1.0, %v1658_v4  ;;  %v1461_v51 = vsel %vm40_vm10, 1.0, %v1658_v4  ;;  %1494 = vmatpush1.bf16.msk.msra.mxu1 %vm1792_vm11, %v1660_v41  ;;  %v1801_v52 = vsub.f32 %v1463_v47, %v1463_v47  ;;  %v1803_v53 = vsub.f32 %v1465_v48, %v1465_v48  ;;  %vm1805_vm12 = vmpackc.low %vm40_vm10, %vm38_vm9  ;;  %p1642_p4 = pnand %p1641_p3, %p1635_p0 }
   0xe   :  { %v1809_v55 = vsub.f32 %v1459_v50, %v1459_v50  ;;  %v1811_v56 = vsub.f32 %v1461_v51, %v1461_v51  ;;  %1518 = vmatpush1.bf16.msk.msra.mxu0 %vm1805_vm12, %v1660_v41  ;;  %v156_v57 = vsub.f32 %v1737_v24, %v1749_v32  ;;  %v167_v58 = vsub.f32 %v1740_v25, %v1752_v33 }
   0xf   :  { %v199_v59 = vand.u32 4294901760, %v1773_v42  ;;  %v211_v60 = vand.u32 4294901760, %v1775_v43  ;;  %v205_v61 = vand.u32 4294901760, %v1801_v52  ;;  %v217_v62 = vand.u32 4294901760, %v1803_v53 }
  0x10   :  { %v843_v63 = vand.u32 4294901760, %v1809_v55  ;;  %v855_v1 = vand.u32 4294901760, %v1811_v56  ;;  %v157_v2 = vand.u32 4294901760, %v156_v57  ;;  %v168_v3 = vand.u32 4294901760, %v167_v58 }
  0x11   :  { %v200_v5 = vsub.f32 %v1773_v42, %v199_v59  ;;  %v212_v6 = vsub.f32 %v1775_v43, %v211_v60  ;;  %v206_v8 = vsub.f32 %v1801_v52, %v205_v61  ;;  %v218_v9 = vsub.f32 %v1803_v53, %v217_v62 }
  0x12   :  { %v844_v10 = vsub.f32 %v1809_v55, %v843_v63  ;;  %v856_v11 = vsub.f32 %v1811_v56, %v855_v1  ;;  %158 = vmatmul.mubr.f32.vlgmr.msra.gmra.mrb[0].mxu1 %v157_v2  ;;  %796 = vmatmul.mubr.f32.vlgmr.msra.gmra.mrb[0].mxu0 %v157_v2  ;;  %v837_v17 = vand.u32 4294901760, %v1781_v45  ;;  %v849_v18 = vand.u32 4294901760, %v1783_v46 }
  0x13   :  { %v201_v12 = vand.u32 4294901760, %v200_v5  ;;  %v213_v13 = vand.u32 4294901760, %v212_v6  ;;  %v207_v19 = vand.u32 4294901760, %v206_v8  ;;  %v219_v20 = vand.u32 4294901760, %v218_v9  ;;  %163 = vmatprep.mubr.f32.mxu1 %v1658_v4  ;;  %801 = vmatprep.mubr.f32.mxu0 %v1658_v4 }
  0x14   :  { %v845_v21 = vand.u32 4294901760, %v844_v10  ;;  %v857_v23 = vand.u32 4294901760, %v856_v11  ;;  %v838_v28 = vsub.f32 %v1781_v45, %v837_v17  ;;  %v850_v29 = vsub.f32 %v1783_v46, %v849_v18 }
  0x15   :  { %v1495_v27 = vpack.c.bf16 %v213_v13, %v201_v12  ;;  %v178_v30 = vsub.f32 %v1743_v26, %v1755_v34  ;;  %v1497_v31 = vpack.c.bf16 %v219_v20, %v207_v19  ;;  %v1499_v37 = vpack.c.bf16 %v1775_v43, %v1773_v42 }
  0x16   :  { %169 = vmatmul.mubr.f32.gmra.mrb[2].mxu1 %v168_v3  ;;  %807 = vmatmul.mubr.f32.gmra.mrb[2].mxu0 %v168_v3  ;;  %v839_v39 = vand.u32 4294901760, %v838_v28  ;;  %v851_v40 = vand.u32 4294901760, %v850_v29  ;;  %v1521_v48 = vpack.c.bf16 %v857_v23, %v845_v21  ;;  %v189_v50 = vsub.f32 %v1758_v35, %v1857_v36 }
  0x17   :  { %v179_v47 = vand.u32 4294901760, %v178_v30  ;;  %1496 = vmatprep.subr.bf16.mxu1 %v1495_v27  ;;  %174 = vmatprep.mubr.f32.mxu1 %v1658_v4  ;;  %v1523_v57 = vpack.c.bf16 %v1783_v46, %v1781_v45  ;;  %v1501_v2 = vpack.c.bf16 %v1803_v53, %v1801_v52  ;;  %v1525_v3 = vpack.c.bf16 %v1811_v56, %v1809_v55 }
  0x18   :  { %v1519_v51 = vpack.c.bf16 %v851_v40, %v839_v39  ;;  %1498 = vmatpush1.bf16.msra.mxu1 %v1497_v31  ;;  %812 = vmatprep.mubr.f32.mxu0 %v1658_v4  ;;  %v190_v58 = vand.u32 4294901760, %v189_v50  ;;  %v1507_v5 = vpack.c.bf16 %v211_v60, %v199_v59  ;;  %v1531_v6 = vpack.c.bf16 %v849_v18, %v837_v17 }
  0x19   :  { %1500 = vmatprep.subr.bf16.mxu1 %v1499_v37  ;;  %vm1442_vm13 = vcmp.lt.s32.totalorder %v27_v0, 256 }
  0x1a   :  { %1520 = vmatprep.subr.bf16.mxu0 %v1519_v51  ;;  %180 = vmatmul.mubr.f32.gmra.mrb[4].mxu1 %v179_v47 }
  0x1b   :  { %1522 = vmatpush1.bf16.msra.mxu0 %v1521_v48  ;;  %185 = vmatprep.mubr.f32.mxu1 %v1658_v4 }
  0x1c   :  { %818 = vmatmul.mubr.f32.gmra.mrb[4].mxu0 %v179_v47  ;;  %1524 = vmatprep.subr.bf16.mxu0 %v1523_v57 }
  0x1d   :  { %823 = vmatprep.mubr.f32.mxu0 %v1658_v4 }
  0x1e   :  { %191 = vmatmul.mubr.f32.gmra.mrb[6].mxu1 %v190_v58 }
  0x1f   :  { %281 = vmatprep.mubr.f32.mxu1 %v1658_v4 }
  0x20   :  { %829 = vmatmul.mubr.f32.gmra.mrb[6].mxu0 %v190_v58 }
  0x21   :  { %919 = vmatprep.mubr.f32.mxu0 %v1658_v4 }
  0x22   :  { %283 = vmatmul.mubr.f32.vlgmr.msra.gmra.mrb[0].mxu1 %v1719_v14 }
  0x23   :  { %288 = vmatprep.mubr.f32.mxu1 %v1658_v4  ;;  %1502 = vmatpush1.bf16.msra.mxu1 %v1501_v2  ;;  %v1661_v2 = vmov 1966171168  }
  0x24   :  { %921 = vmatmul.mubr.f32.vlgmr.msra.gmra.mrb[0].mxu0 %v1719_v14  ;;  %1504 = vmatprep.subr.msk.bf16.mxu1 %vm1764_vm5, %v1660_v41 }
  0x25   :  { %926 = vmatprep.mubr.f32.mxu0 %v1658_v4  ;;  %1526 = vmatpush1.bf16.msra.mxu0 %v1525_v3  ;;  %v1426_v3 = vunpack.c.l.s4 %v1661_v2 }
  0x26   :  { %290 = vmatmul.mubr.f32.gmra.mrb[2].mxu1 %v1721_v15  ;;  %1528 = vmatprep.subr.msk.bf16.mxu0 %vm1777_vm6, %v1660_v41 }
  0x27   :  { %295 = vmatprep.mubr.f32.mxu1 %v1658_v4 }
  0x28   :  { %928 = vmatmul.mubr.f32.gmra.mrb[2].mxu0 %v1721_v15 }
  0x29   :  { %933 = vmatprep.mubr.f32.mxu0 %v1658_v4 }
  0x2a   :  { %297 = vmatmul.mubr.f32.gmra.mrb[4].mxu1 %v1723_v16 }
  0x2b   :  { %302 = vmatprep.mubr.f32.mxu1 %v1658_v4 }
  0x2c   :  { %935 = vmatmul.mubr.f32.gmra.mrb[4].mxu0 %v1723_v16 }
  0x2d   :  { %940 = vmatprep.mubr.f32.mxu0 %v1658_v4 }
  0x2e   :  { %304 = vmatmul.mubr.f32.gmra.mrb[6].mxu1 %v1731_v22 }
  0x2f   :  { %382 = vmatprep.mubr.f32.mxu1 %v1658_v4 }
  0x30   :  { %942 = vmatmul.mubr.f32.gmra.mrb[6].mxu0 %v1731_v22 }
  0x31   :  { %1020 = vmatprep.mubr.f32.mxu0 %v1658_v4 }
  0x32   :  { %385 = vmatmul.mubr.f32.vlgmr.msra.gmra.mrb[0].mxu1 %v1737_v24 }
  0x33   :  { %390 = vmatprep.mubr.f32.mxu1 %v1658_v4  ;;  %1506 = vmatpush1.bf16.msk.msra.mxu1 %vm1792_vm11, %v1660_v41 }
  0x34   :  { %1023 = vmatmul.mubr.f32.vlgmr.msra.gmra.mrb[0].mxu0 %v1737_v24  ;;  %1508 = vmatprep.subr.bf16.mxu1 %v1507_v5  ;;  %v1509_v24 = vpack.c.bf16 %v217_v62, %v205_v61 }
  0x35   :  { %1028 = vmatprep.mubr.f32.mxu0 %v1658_v4  ;;  %1530 = vmatpush1.bf16.msk.msra.mxu0 %vm1805_vm12, %v1660_v41 }
  0x36   :  { %393 = vmatmul.mubr.f32.gmra.mrb[2].mxu1 %v1740_v25  ;;  %1532 = vmatprep.subr.bf16.mxu0 %v1531_v6 }
  0x37   :  { %398 = vmatprep.mubr.f32.mxu1 %v1658_v4 }
  0x38   :  { %1031 = vmatmul.mubr.f32.gmra.mrb[2].mxu0 %v1740_v25  ;;  %v1533_v25 = vpack.c.bf16 %v855_v1, %v843_v63 }
  0x39   :  { %1036 = vmatprep.mubr.f32.mxu0 %v1658_v4 }
  0x3a   :  { %401 = vmatmul.mubr.f32.gmra.mrb[4].mxu1 %v1743_v26 }
  0x3b   :  { %406 = vmatprep.mubr.f32.mxu1 %v1658_v4 }
  0x3c   :  { %1039 = vmatmul.mubr.f32.gmra.mrb[4].mxu0 %v1743_v26 }
  0x3d   :  { %1044 = vmatprep.mubr.f32.mxu0 %v1658_v4 }
  0x3e   :  { %409 = vmatmul.mubr.f32.gmra.mrb[6].mxu1 %v1758_v35 }
  0x3f   :  { %483 = vmatprep.mubr.f32.mxu1 %v1658_v4 }
  0x40   :  { %1047 = vmatmul.mubr.f32.gmra.mrb[6].mxu0 %v1758_v35 }
  0x41   :  { %1121 = vmatprep.mubr.f32.mxu0 %v1658_v4 }
  0x42   :  { %487 = vmatmul.mubr.f32.vlgmr.msra.gmra.mrb[0].mxu1 %v1749_v32 }
  0x43   :  { %492 = vmatprep.mubr.f32.mxu1 %v1658_v4  ;;  %1510 = vmatpush1.bf16.msra.mxu1 %v1509_v24 }
  0x44   :  { %1125 = vmatmul.mubr.f32.vlgmr.msra.gmra.mrb[0].mxu0 %v1749_v32  ;;  %1512 = vmatprep.subr.msk.bf16.mxu1 %vm1764_vm5, %v1660_v41 }
  0x45   :  { %1130 = vmatprep.mubr.f32.mxu0 %v1658_v4  ;;  %1534 = vmatpush1.bf16.msra.mxu0 %v1533_v25 }
  0x46   :  { %496 = vmatmul.mubr.f32.gmra.mrb[2].mxu1 %v1752_v33  ;;  %1536 = vmatprep.subr.msk.bf16.mxu0 %vm1777_vm6, %v1660_v41 }
  0x47   :  { %501 = vmatprep.mubr.f32.mxu1 %v1658_v4 }
  0x48   :  { %1134 = vmatmul.mubr.f32.gmra.mrb[2].mxu0 %v1752_v33 }
  0x49   :  { %1139 = vmatprep.mubr.f32.mxu0 %v1658_v4 }
  0x4a   :  { %505 = vmatmul.mubr.f32.gmra.mrb[4].mxu1 %v1755_v34 }
  0x4b   :  { %510 = vmatprep.mubr.f32.mxu1 %v1658_v4 }
  0x4c   :  { %1143 = vmatmul.mubr.f32.gmra.mrb[4].mxu0 %v1755_v34 }
  0x4d   :  { %1148 = vmatprep.mubr.f32.mxu0 %v1658_v4 }
  0x4e   :  { %514 = vmatmul.mubr.f32.gmra.mrb[6].mxu1 %v1857_v36 }
  0x4f   :  { %596 = vmatprep.mubr.f32.mxu1 %v1658_v4 }
  0x50   :  { %1152 = vmatmul.mubr.f32.gmra.mrb[6].mxu0 %v1857_v36 }
  0x51   :  { %1234 = vmatprep.mubr.f32.mxu0 %v1658_v4 }
  0x52   :  { %598 = vmatmul.mubr.f32.vlgmr.msra.gmra.mrb[0].mxu1 %v1719_v14 }
  0x53   :  { %603 = vmatprep.mubr.f32.mxu1 %v1658_v4  ;;  %1514 = vmatpush1.bf16.msk.msra.mxu1 %vm1792_vm11, %v1660_v41 }
  0x54   :  { %1236 = vmatmul.mubr.f32.vlgmr.msra.gmra.mrb[0].mxu0 %v1719_v14 }
  0x55   :  { %1241 = vmatprep.mubr.f32.mxu0 %v1658_v4  ;;  %1538 = vmatpush1.bf16.msk.msra.mxu0 %vm1805_vm12, %v1660_v41 }
  0x56   :  { %605 = vmatmul.mubr.f32.gmra.mrb[2].mxu1 %v1721_v15 }
  0x57   :  { %610 = vmatprep.mubr.f32.mxu1 %v1658_v4 }
  0x58   :  { %1243 = vmatmul.mubr.f32.gmra.mrb[2].mxu0 %v1721_v15 }
  0x59   :  { %1248 = vmatprep.mubr.f32.mxu0 %v1658_v4 }
  0x5a   :  { %612 = vmatmul.mubr.f32.gmra.mrb[4].mxu1 %v1723_v16 }
  0x5b   :  { %617 = vmatprep.mubr.f32.mxu1 %v1658_v4 }
  0x5c   :  { %1250 = vmatmul.mubr.f32.gmra.mrb[4].mxu0 %v1723_v16 }
  0x5d   :  { %1255 = vmatprep.mubr.f32.mxu0 %v1658_v4 }
  0x5e   :  { %619 = vmatmul.mubr.f32.gmra.mrb[6].mxu1 %v1731_v22 }
  0x5f   :  { %693 = vmatprep.mubr.f32.mxu1 %v1658_v4 }
  0x60   :  { %1257 = vmatmul.mubr.f32.gmra.mrb[6].mxu0 %v1731_v22 }
  0x61   :  { %1331 = vmatprep.mubr.f32.mxu0 %v1658_v4 }
  0x62   :  { %695 = vmatmul.mubr.f32.vlgmr.msra.gmra.mrb[0].mxu1 %v1719_v14 }
  0x63   :  { %700 = vmatprep.mubr.f32.mxu1 %v1658_v4 }
  0x64   :  { %1333 = vmatmul.mubr.f32.vlgmr.msra.gmra.mrb[0].mxu0 %v1719_v14 }
  0x65   :  { %1338 = vmatprep.mubr.f32.mxu0 %v1658_v4 }
  0x66   :  { %702 = vmatmul.mubr.f32.gmra.mrb[2].mxu1 %v1721_v15 }
  0x67   :  { %707 = vmatprep.mubr.f32.mxu1 %v1658_v4 }
  0x68   :  { %1340 = vmatmul.mubr.f32.gmra.mrb[2].mxu0 %v1721_v15 }
  0x69   :  { %1345 = vmatprep.mubr.f32.mxu0 %v1658_v4 }
  0x6a   :  { %709 = vmatmul.mubr.f32.gmra.mrb[4].mxu1 %v1723_v16 }
  0x6b   :  { %714 = vmatprep.mubr.f32.mxu1 %v1658_v4 }
  0x6c   :  { %1347 = vmatmul.mubr.f32.gmra.mrb[4].mxu0 %v1723_v16 }
  0x6d   :  { %1352 = vmatprep.mubr.f32.mxu0 %v1658_v4 }
  0x6e   :  { %716 = vmatmul.mubr.f32.gmra.mrb[6].mxu1 %v1731_v22 }
  0x70   :  { %1354 = vmatmul.mubr.f32.gmra.mrb[6].mxu0 %v1731_v22 }
  0x84   :  { %v1375_v33 = vpop.permute.xlu0 %1374  ;;  %v1385_v1 = vpop.permute.xlu1 %1384 }
  0x88   :  { %v1380_v4 = vpop.permute.xlu0 %1379  ;;  %v1390_v31 = vpop.permute.xlu1 %1389 }
 0x135   :  { %v696_v14 = vpop.f32.mrb[0].mxu1 }
 0x136   :  { %v698_v26 = vpop.f32.mrb[1].mxu1 }
 0x137   :  { %v1334_v32 = vpop.f32.mrb[0].mxu0 }
 0x138   :  { %v1539_v34 = vadd.f32 %v1334_v32, %v696_v14  ;;  %v1336_v15 = vpop.f32.mrb[1].mxu0  ;;  %v1419_v14 = vstv %s2014_s4 }
 0x139   :  { %v1540_v35 = vadd.f32 %v1336_v15, %v698_v26  ;;  %v703_v38 = vpop.f32.mrb[2].mxu1  ;;  %v1427_v26 = vunpack.c.0.s8 %v1426_v3 }
 0x13a   :  { %v705_v41 = vpop.f32.mrb[3].mxu1  ;;  %v1360_v43 = vmul.f32 0.5, %v1539_v34 }
 0x13b   :  { %v1341_v42 = vpop.f32.mrb[2].mxu0  ;;  %v1361_v16 = vmul.f32 0.5, %v1540_v35  ;;  %v1430_v35 = vsub.s32 %v1427_v26, %v1711_v7 }
 0x13c   :  { %v1541_v44 = vadd.f32 %v1341_v42, %v703_v38  ;;  %v1343_v45 = vpop.f32.mrb[3].mxu0  ;;  %v1392_v55 = vmul.f32 %v1375_v33, %v1360_v43 }
 0x13d   :  { %v1542_v46 = vadd.f32 %v1343_v45, %v705_v41  ;;  %v710_v49 = vpop.f32.mrb[4].mxu1  ;;  %v1393_v61 = vmul.f32 %v1375_v33, %v1361_v16 }
 0x13e   :  { %v1362_v52 = vmul.f32 0.5, %v1541_v44  ;;  %v712_v53 = vpop.f32.mrb[5].mxu1 }
 0x13f   :  { %v1363_v22 = vmul.f32 0.5, %v1542_v46  ;;  %v1348_v54 = vpop.f32.mrb[4].mxu0 }
 0x140   :  { %v1394_v56 = vmul.f32 %v1380_v4, %v1362_v52  ;;  %v1543_v59 = vadd.f32 %v1348_v54, %v710_v49  ;;  %v1350_v60 = vpop.f32.mrb[5].mxu0 }
 0x141   :  { %v1395_v62 = vmul.f32 %v1380_v4, %v1363_v22  ;;  %v1544_v63 = vadd.f32 %v1350_v60, %v712_v53  ;;  %v717_v8 = vpop.f32.mrb[6].mxu1 }
 0x142   :  { %v1400_v9 = vadd.f32 %v1394_v56, %v1392_v55  ;;  %v1364_v10 = vmul.f32 0.5, %v1543_v59  ;;  %v719_v11 = vpop.f32.mrb[7].mxu1 }
 0x143   :  { %v1409_v12 = vadd.f32 %v1395_v62, %v1393_v61  ;;  %v1365_v13 = vmul.f32 0.5, %v1544_v63  ;;  %v1355_v17 = vpop.f32.mrb[6].mxu0 }
 0x144   :  { %v1396_v18 = vmul.f32 %v1385_v1, %v1364_v10  ;;  %v1545_v19 = vadd.f32 %v1355_v17, %v717_v8  ;;  %v1357_v20 = vpop.f32.mrb[7].mxu0 }
 0x145   :  { %v1397_v21 = vmul.f32 %v1385_v1, %v1365_v13  ;;  %v1546_v23 = vadd.f32 %v1357_v20, %v719_v11 }
 0x146   :  { %v1401_v27 = vadd.f32 %v1400_v9, %v1396_v18  ;;  %v1366_v28 = vmul.f32 0.5, %v1545_v19 }
 0x147   :  { %v1410_v29 = vadd.f32 %v1409_v12, %v1397_v21  ;;  %v1367_v30 = vmul.f32 0.5, %v1546_v23 }
 0x148   :  { %v1398_v36 = vmul.f32 %v1390_v31, %v1366_v28 }
 0x149   :  { %v1399_v37 = vmul.f32 %v1390_v31, %v1367_v30 }
 0x14a   :  { %v1402_v39 = vadd.f32 %v1401_v27, %v1398_v36 }
 0x14b   :  { %v1411_v40 = vadd.f32 %v1410_v29, %v1399_v37 }
 0x14c   :  { %v1403_v47 = vrot.slane %v1402_v39, 4 }
 0x14d   :  { %v1412_v48 = vrot.slane %v1411_v40, 4 }
 0x14e   :  { %v1404_v50 = vadd.f32 %v1403_v47, %v1402_v39 }
 0x14f   :  { %v1413_v51 = vadd.f32 %v1412_v48, %v1411_v40 }
 0x150   :  { %v1405_v57 = vrot.slane %v1404_v50, 2 }
 0x151   :  { %v1414_v58 = vrot.slane %v1413_v51, 2 }
 0x152   :  { %v1406_v5 = vadd.f32 %v1405_v57, %v1404_v50 }
 0x153   :  { %v1415_v6 = vadd.f32 %v1414_v58, %v1413_v51 }
 0x154   :  { %v1407_v24 = vrot.slane %v1406_v5, 1 }
 0x155   :  { %v1416_v25 = vrot.slane %v1415_v6, 1 }
 0x156   :  { %v1408_v32 = vadd.f32 %v1407_v24, %v1406_v5 }
 0x157   :  { %v1417_v33 = vadd.f32 %v1416_v25, %v1415_v6 }
 0x158   :  { %v1420_v34 = vadd.f32 %v1419_v14, %v1408_v32 }
 0x159   :  { %v1421_v15 = vadd.f32 %v1419_v14, %v1417_v33 }
 0x15b   :  { %v1424_v38 = vcombine.low %v1420_v34, %v1421_v15 }
 0x15d   :  { %v1431_v41 = vrot.slane %v1424_v38, %v1430_v35 }
 0x15f   :  { %v1438_v42 = vrot.slane %v1431_v41, %v1430_v35 }
 0x161   :  { %1444 = vst.msk [vmem:[#allocation3] sm:$0x3] %vm1442_vm13, %v1438_v42 }
 0x162   :  { %1645 = shalt.err (!%p1642_p4)
}
 0x163   :  { %s1646_s15 = scalar_lea.hbm %s2015_s5, 32 }
 0x164   :  { %p1647_p5 = scmp.ne.s32.totalorder %s2015_s5, %s1646_s15  ;;  %p1650_p6 = scmp.lt.u32.totalorder %s1646_s15, %s2015_s5 }
 0x166   :  { %p1652_p7 = pnand %p1650_p6, %p1647_p5 }
 0x168   :  { %1655 = shalt.err (!%p1652_p7)
}
 0x169   :  { %1454 = dma.vmem_to_hbm [thread:$0]  %s1452_s12, 32, %s2015_s5, [#allocation4]  }
 0x16a   :  { %1656 = dma.done.wait [#allocation4], 32  }
 0x16b   :  { %1657 = vsyncadd [#allocation4], 4294967264 }
 0x16c   :  { %1458 = vsyncpa [#allocation4], 1 }

</bundles_post_ra>
